<compile_context>
chip_gen: v6e
topology: v6e:2x2x1
jax: 0.10.0
libtpu: 0.0.40
codegen_flags: <defaults>
</compile_context>

<pallas_src>
import math
import functools

import numpy as np
import jax
import jax.numpy as jnp
from jax.experimental import pallas as pl
from jax.experimental.pallas import tpu as pltpu


def _create_weight_mask(patch_size: int) -> jnp.ndarray:
    """Gaussian weight mask, same formula as the PyTorch buffer."""
    x = jnp.linspace(-1.0, 1.0, patch_size, dtype=jnp.float32)
    y = jnp.linspace(-1.0, 1.0, patch_size, dtype=jnp.float32)
    xx, yy = jnp.meshgrid(x, y, indexing="ij")
    return jnp.exp(-(xx * xx + yy * yy) / 1.5).astype(jnp.float32)


def _calculate_grid(H: int, W: int, patch_size: int, min_overlap: int):
    """Mirror of _calculate_grid (float32 stride like torch.tensor(..., float32))."""
    Hf, Wf = float(H), float(W)
    ps, mo = float(patch_size), float(min_overlap)
    n_patches_h = math.ceil((Hf - mo) / (ps - mo))
    n_patches_w = math.ceil((Wf - mo) / (ps - mo))
    stride_h = float(np.float32((Hf - ps) / max(n_patches_h - 1, 1)))
    stride_w = float(np.float32((Wf - ps) / max(n_patches_w - 1, 1)))
    return n_patches_h, n_patches_w, stride_h, stride_w


def _is_v5e() -> bool:
    try:
        kind = jax.devices()[0].device_kind.lower()
    except Exception:
        return False
    return ("v5e" in kind) or ("v5 lite" in kind) or ("v5lite" in kind)


def _band_kernel(h_starts_ref, x_ref, sel_ref, mask_ref, out_ref, *,
                 patch_size, num_channels, w_starts, use_mxu, mxu_precision):
    # One grid step = (batch b, row band i).
    #   h_starts_ref: (nph,) int32 in SMEM (scalar prefetch)
    #   x_ref:   (C, H, W)      image of batch b, resident across the band axis
    #   sel_ref: (W, npw*P)     0/1 column-window selection matrix (resident)
    #   mask_ref:(P, npw*P)     gaussian mask tiled over column windows
    #   out_ref: (C*P, npw*P)   one band slab
    P = patch_size
    C = num_channels
    W = x_ref.shape[-1]
    X = out_ref.shape[-1]                                   # npw * P

    hs = h_starts_ref[pl.program_id(1)]
    band = x_ref[:, pl.ds(hs, P), :]                        # (C, P, W)

    if use_mxu:
        # MXU column gather: contraction over W; 0/1 weights keep it exact
        # (HIGHEST for f32 inputs, DEFAULT for bf16).
        slab = jax.lax.dot(band.reshape(C * P, W), sel_ref[...],
                           precision=mxu_precision,
                           preferred_element_type=jnp.float32)   # (C*P, X)
        slab = slab.astype(out_ref.dtype).reshape(C, P, X)
    else:
        # v5e f32 fallback: register-level gather (static slices + concat).
        slab = jnp.concatenate(
            [band[:, :, ws:ws + P] for ws in w_starts], axis=-1)  # (C, P, X)

    slab = slab * mask_ref[...][None, :, :]                 # one vmul / vreg
    out_ref[...] = slab.reshape(C * P, X)                   # single slab store


def size_preserving_patch_layer(x, patch_size=8, min_overlap=2,
                                use_mxu_gather=None):
    """Functional equivalent of SizePreservingPatchLayerONNX.forward."""
    B, C, H, W = x.shape
    P = patch_size
    nph, npw, stride_h, stride_w = _calculate_grid(H, W, P, min_overlap)

    h_starts = [min(int(round(i * stride_h)), H - P) for i in range(nph)]
    w_starts = [min(int(round(j * stride_w)), W - P) for j in range(npw)]
    locations = [(h, w) for h in h_starts for w in w_starts]
    N = nph * npw
    X = npw * P

    if use_mxu_gather is None:
        # On v5e a 6-pass HIGHEST f32 selection matmul can exceed the per-band
        # HBM budget; keep the register gather there (3 XLUs).  Everywhere
        # else (and for bf16 anywhere) the MXU gather wins.
        use_mxu_gather = not (_is_v5e() and x.dtype == jnp.float32)
    mxu_precision = (jax.lax.Precision.HIGHEST
                     if x.dtype == jnp.float32 else jax.lax.Precision.DEFAULT)

    # Gaussian mask (exact exp-of-sum formula), cast to x.dtype like
    # `weight_mask.to(x.dtype)`, tiled across the npw column windows.
    mask = _create_weight_mask(P).astype(x.dtype)           # (P, P)
    mask_tiled = jnp.tile(mask, (1, npw))                   # (P, X)

    # 0/1 column-window selection matrix: column j*P + p picks input column
    # w_starts[j] + p.
    sel_np = np.zeros((W, X), dtype=np.float32)
    for j, ws in enumerate(w_starts):
        sel_np[ws + np.arange(P), j * P + np.arange(P)] = 1.0
    sel = jnp.asarray(sel_np, dtype=x.dtype)

    h_starts_arr = jnp.asarray(h_starts, dtype=jnp.int32)

    kernel = functools.partial(
        _band_kernel, patch_size=P, num_channels=C, w_starts=tuple(w_starts),
        use_mxu=bool(use_mxu_gather), mxu_precision=mxu_precision)

    out_shape = jax.ShapeDtypeStruct((B, nph, C * P, X), x.dtype)

    # VMEM limit: unconditional (v5e default scoped VMEM ~16 MiB), capped at
    # 3/4 of physical VMEM (64 MiB on v7x).
    itemsize = np.dtype(x.dtype).itemsize
    est_bytes = itemsize * (2 * C * H * W      # resident image, double-buffered
                            + 2 * C * P * X    # output band slab, double-buffered
                            + 2 * W * X        # selection matrix
                            + 2 * P * X)       # mask
    try:
        vmem_cap = int(pltpu.get_tpu_info().vmem_capacity_bytes)
    except Exception:
        vmem_cap = 64 * 1024 * 1024            # assume the smallest (v7x) if query fails
    vmem_limit = min(max(int(est_bytes * 1.5) + (4 << 20), 32 << 20),
                     (vmem_cap * 3) // 4)

    flops = B * nph * C * P * X                              # mask multiply
    if use_mxu_gather:
        flops += 2 * B * nph * (C * P) * W * X               # selection matmul
    cost = pl.CostEstimate(
        flops=int(flops), transcendentals=0,
        bytes_accessed=int(itemsize * (B * C * H * W + B * nph * C * P * X
                                       + W * X + P * X)))

    slabs = pl.pallas_call(
        kernel,
        out_shape=out_shape,
        grid_spec=pltpu.PrefetchScalarGridSpec(
            num_scalar_prefetch=1,
            grid=(B, nph),
            in_specs=[
                # Image resident across the band axis (index constant over i).
                pl.BlockSpec((None, C, H, W), lambda b, i, hs: (b, 0, 0, 0)),
                pl.BlockSpec((W, X), lambda b, i, hs: (0, 0)),
                pl.BlockSpec((P, X), lambda b, i, hs: (0, 0)),
            ],
            out_specs=pl.BlockSpec((None, None, C * P, X),
                                   lambda b, i, hs: (b, i, 0, 0)),
        ),
        compiler_params=pltpu.CompilerParams(
            dimension_semantics=("parallel", "parallel"),
            vmem_limit_bytes=vmem_limit),
        cost_estimate=cost,
    )(h_starts_arr, x, sel, mask_tiled)

    # Wrapper-side layout plumbing back to the PyTorch output layout:
    # (B, nph, C*P, npw*P) -> (B, nph, C, P, npw, P) -> (B, nph, npw, C, P, P)
    # -> (B, N, C, P, P) with N ordered rows-outer / cols-inner (torch.stack order).
    patches = slabs.reshape(B, nph, C, P, npw, P)
    patches = jnp.transpose(patches, (0, 1, 4, 2, 3, 5))
    patches = patches.reshape(B, N, C, P, P)
    return patches, (locations, (H, W))


if __name__ == "__main__":
    PATCH_SIZE = 8
    MIN_OVERLAP = 2

    key = jax.random.PRNGKey(0)
    x = jax.random.normal(key, (2, 4, 16, 16), dtype=jnp.float32)

    patches, (locations, (H, W)) = size_preserving_patch_layer(
        x, patch_size=PATCH_SIZE, min_overlap=MIN_OVERLAP)
    patches = jax.block_until_ready(patches)

    # Pure-JAX reference check of the forward semantics.
    mask = _create_weight_mask(PATCH_SIZE).astype(x.dtype)
    ref = jnp.stack(
        [x[:, :, h:h + PATCH_SIZE, w:w + PATCH_SIZE] for (h, w) in locations],
        axis=1,
    ) * mask[None, None, None, :, :]
    np.testing.assert_allclose(np.asarray(patches), np.asarray(ref),
                               rtol=1e-6, atol=1e-6)
    assert patches.shape == (2, len(locations), 4, PATCH_SIZE, PATCH_SIZE)
    assert (H, W) == (16, 16)

    print("KERNEL_OK")
</pallas_src>

<mosaic_0001>
module attributes {stable_mosaic.version = 11 : i64} {
  func.func @_band_kernel(%arg0: i32, %arg1: i32, %arg2: memref<3xi32, #tpu.memory_space<smem>>, %arg3: memref<1x4x16x16xf32, #tpu.memory_space<vmem>>, %arg4: memref<16x24xf32, #tpu.memory_space<vmem>>, %arg5: memref<8x24xf32, #tpu.memory_space<vmem>>, %arg6: memref<1x1x32x24xf32, #tpu.memory_space<vmem>>) attributes {dimension_semantics = [#tpu.dimension_semantics<parallel>, #tpu.dimension_semantics<parallel>], iteration_bounds = array<i64: 2, 3>, scalar_prefetch = 1 : i64, scratch_operands = 0 : i64, tpu.core_type = #tpu.core_type<tc>, window_params = [{transform_indices = @transform_0, window_bounds = array<i64: 1, 4, 16, 16>}, {pipeline_mode = #tpu.pipeline_mode<synchronous>, transform_indices = @transform_1, window_bounds = array<i64: 16, 24>}, {pipeline_mode = #tpu.pipeline_mode<synchronous>, transform_indices = @transform_2, window_bounds = array<i64: 8, 24>}, {transform_indices = @transform_3, window_bounds = array<i64: 1, 1, 32, 24>}]} {
    %0 = arith.index_cast %arg1 : i32 to index
    %1 = memref.load %arg2[%0] : memref<3xi32, #tpu.memory_space<smem>>
    %c0 = arith.constant 0 : index
    %c0_0 = arith.constant 0 : index
    %2 = arith.index_cast %1 : i32 to index
    %c0_1 = arith.constant 0 : index
    %3 = vector.load %arg3[%c0, %c0_0, %2, %c0_1] : memref<1x4x16x16xf32, #tpu.memory_space<vmem>>, vector<1x4x8x16xf32>
    %4 = vector.shape_cast %3 : vector<1x4x8x16xf32> to vector<4x8x16xf32>
    %5 = vector.shape_cast %4 : vector<4x8x16xf32> to vector<32x16xf32>
    %c0_2 = arith.constant 0 : index
    %c0_3 = arith.constant 0 : index
    %6 = vector.load %arg4[%c0_2, %c0_3] : memref<16x24xf32, #tpu.memory_space<vmem>>, vector<16x24xf32>
    %cst = arith.constant dense<0.000000e+00> : vector<32x24xf32>
    %7 = tpu.matmul %5, %6, %cst {dimension_numbers = #tpu.dot_dimension_numbers<[1], [0], [0], [1], [0, 0, 1, 1], [], []>, precision = #tpu.contract_precision<fp32>} : vector<32x16xf32>, vector<16x24xf32>, vector<32x24xf32> -> vector<32x24xf32>
    %8 = vector.shape_cast %7 : vector<32x24xf32> to vector<4x8x24xf32>
    %c0_4 = arith.constant 0 : index
    %c0_5 = arith.constant 0 : index
    %9 = vector.load %arg5[%c0_4, %c0_5] : memref<8x24xf32, #tpu.memory_space<vmem>>, vector<8x24xf32>
    %10 = vector.shape_cast %9 : vector<8x24xf32> to vector<1x8x24xf32>
    %11 = vector.broadcast %10 : vector<1x8x24xf32> to vector<4x8x24xf32>
    %12 = arith.mulf %8, %11 : vector<4x8x24xf32>
    %13 = vector.shape_cast %12 : vector<4x8x24xf32> to vector<32x24xf32>
    %c0_6 = arith.constant 0 : index
    %c0_7 = arith.constant 0 : index
    %c0_8 = arith.constant 0 : index
    %c0_9 = arith.constant 0 : index
    %14 = vector.load %arg6[%c0_6, %c0_7, %c0_8, %c0_9] : memref<1x1x32x24xf32, #tpu.memory_space<vmem>>, vector<1x1x32x24xf32>
    %15 = vector.shape_cast %14 : vector<1x1x32x24xf32> to vector<32x24xf32>
    %16 = vector.shape_cast %13 : vector<32x24xf32> to vector<1x1x32x24xf32>
    tpu.vector_store %arg6[%c0_6, %c0_7, %c0_8, %c0_9], %16 {strides = array<i32>} : memref<1x1x32x24xf32, #tpu.memory_space<vmem>>, vector<1x1x32x24xf32>,
    return
  }
  func.func @transform_0(%arg0: i32, %arg1: i32, %arg2: memref<3xi32, #tpu.memory_space<smem>>) -> (i32, i32, i32, i32) {
    %c0_i32 = arith.constant 0 : i32
    %c0_i32_0 = arith.constant 0 : i32
    %c0_i32_1 = arith.constant 0 : i32
    %c0_i32_2 = arith.constant 0 : i32
    return %arg0, %c0_i32, %c0_i32_0, %c0_i32_1 : i32, i32, i32, i32
  }
  func.func @transform_1(%arg0: i32, %arg1: i32, %arg2: memref<3xi32, #tpu.memory_space<smem>>) -> (i32, i32) {
    %c0_i32 = arith.constant 0 : i32
    %c0_i32_0 = arith.constant 0 : i32
    %c0_i32_1 = arith.constant 0 : i32
    return %c0_i32, %c0_i32_0 : i32, i32
  }
  func.func @transform_2(%arg0: i32, %arg1: i32, %arg2: memref<3xi32, #tpu.memory_space<smem>>) -> (i32, i32) {
    %c0_i32 = arith.constant 0 : i32
    %c0_i32_0 = arith.constant 0 : i32
    %c0_i32_1 = arith.constant 0 : i32
    return %c0_i32, %c0_i32_0 : i32, i32
  }
  func.func @transform_3(%arg0: i32, %arg1: i32, %arg2: memref<3xi32, #tpu.memory_space<smem>>) -> (i32, i32, i32, i32) {
    %c0_i32 = arith.constant 0 : i32
    %c0_i32_0 = arith.constant 0 : i32
    %c0_i32_1 = arith.constant 0 : i32
    return %arg0, %arg1, %c0_i32, %c0_i32_0 : i32, i32, i32, i32
  }
}

</mosaic_0001>

<bundles_post_ra>
// kernel: tpu_custom_call.1
= control target key start
LH: loop header
LB: loop body
LE: loop exit
PB: predicated region body
PF: predicated region fallthrough
CT: control target
= control target key end

     0   :  { %s1354_s15 = smov [#allocation3]   ;;  %s1599_s0 = inlined_call_operand.hbm [shape: s32[3], index: 0, kind: input, shape index: {}]   ;;  %s1600_s1 = inlined_call_operand.hbm [shape: f32[2,4,16,16], index: 1, kind: input, shape index: {}]   ;;  %s1601_s2 = inlined_call_operand.hbm [shape: f32[16,24], index: 2, kind: input, shape index: {}]   ;;  %s1602_s3 = inlined_call_operand.hbm [shape: f32[8,24], index: 3, kind: input, shape index: {}]   ;;  %s1603_s4 = inlined_call_operand.vmem [shape: f32[2,3,32,24], index: 4, kind: output, shape index: {}]  }
   0x1   :  { %10 = dma.hbm_to_smem %s1599_s0, 16, %s1354_s15, [#allocation2] }
   0x2   :  { %1312 = dma.done.wait [#allocation2], 16 }
   0x3   :  { %1313 = vsyncadd [#allocation2], 4294967280 }
   0x4   :  { %12 = sfence }
   0x5   :  { %13 = vsyncpa [#allocation5], 0 }
   0x6   :  { %15 = vsyncpa [#allocation5 + $0x1], 0 }
   0x7   :  { %16 = vsyncpa [#allocation7], 0  ;;  %s1388_s18 = smov 0   ;;  %s1390_s19 = smov 0  }
   0x8   :  { %s1392_s20 = smov 0   ;;  %s1394_s21 = smov 0  }
   0x9   :  { %s1396_s22 = smov 0   ;;  %s1398_s23 = smov 0  }
   0xa   :  { %s1400_s24 = smov 0   ;;  %s1402_s0 = smov 0  }
   0xb LB: > { %s982_s25 = sadd.s32 4294967295, %s1352_s0   ;;  %p54_p0 = scmp.ne.s32.totalorder %s1328_s19, %s1324_s18  ;;  %s1352_s0 = sphi %s1402_s0, %s22_s0   ;;  %s1348_s24 = sphi %s1400_s24, %s1620_s24   ;;  %s1344_s23 = sphi %s1398_s23, %s1619_s23   ;;  %s1340_s22 = sphi %s1396_s22, %s1618_s22   ;;  %s1336_s21 = sphi %s1394_s21, %s1617_s21   ;;  %s1332_s20 = sphi %s1392_s20, %s1616_s20   ;;  %s1328_s19 = sphi %s1390_s19, %s1615_s19   ;;  %s1324_s18 = sphi %s1388_s18, %s1614_s18  }
   0xc   : > { %p1428_p1 = scmp.eq.s32.totalorder %s982_s25, 0  ;;  %p984_p2 = scmp.ge.s32.totalorder %s1352_s0, 1 }
   0xd   : > { %p135_p3 = scmp.lt.s32.totalorder %s1352_s0, 7  ;;  %s1355_s29 = smov [#allocation6]  }
   0xe   : > { %p1436_p4 = por %p1428_p1, %p54_p0  ;;  %s147_s30 = sshll.u32 %s1355_s29, 4  ;;  %s148_s30 = int_to_ptr.vmem [resolvable:$true] %s147_s30 }
   0xf   : > { %p1440_p5 = pnand %p984_p2, %p135_p3  ;;  %s1356_s6 = smov [#allocation8]  }
  0x10   : > { %s161_s7 = sshll.u32 %s1356_s6, 4  ;;  %s1211_s8 = scalar_lea.vmem %s148_s30, 256  ;;  %s162_s7 = int_to_ptr.vmem [resolvable:$true] %s161_s7 }
  0x11   : > { %p1107_p6 = pneg %p1440_p5  ;;  %p1212_p9 = scmp.ne.s32.totalorder %s148_s30, %s1211_s8 }
  0x12   : > { %p1219_p12 = scmp.lt.s32.totalorder %s148_s30, %s148_s30  ;;  %p1220_p13 = scmp.lt.s32.totalorder %s1211_s8, %s1211_s8 }
  0x13   : > { %p1448_p7 = pnand %p1107_p6, %p1428_p1 }
  0x14   : > { %p1221_p0 = por %p1220_p13, %p1219_p12 }
  0x15   : > { %p1202_p8 = pneg %p1448_p7 }
  0x17   : > { %p1214_p10 = pnand %p1212_p9, %p1202_p8 }
  0x19   : > { %p1215_p11 = pneg %p1214_p10 }
  0x1b   : > { %p1222_p2 = pnand %p1221_p0, %p1215_p11 }
  0x1d   : > { %1225 = shalt.err (!%p1222_p2)
}
  0x1e   : > { %s1604_s9 = smov 128   ;;  %s1605_s10 = smov 8  }
  0x1f   : > { %1110 = dma.hbm_to_vmem [thread:$0]  (!%p1448_p7), %s1601_s2, 256, %s148_s30, [#allocation7], %s1604_s9, %s1604_s9, %s1605_s10  }
  0x20   : > { %s1237_s13 = scalar_lea.vmem %s162_s7, 128  ;;  %p1245_p10 = scmp.lt.s32.totalorder %s162_s7, %s162_s7 }
  0x21   : > { %p1238_p3 = scmp.ne.s32.totalorder %s162_s7, %s1237_s13  ;;  %p1246_p11 = scmp.lt.s32.totalorder %s1237_s13, %s1237_s13 }
  0x23   : > { %p1240_p6 = pnand %p1238_p3, %p1202_p8  ;;  %p1247_p12 = por %p1246_p11, %p1245_p10 }
  0x25   : > { %p1241_p9 = pneg %p1240_p6 }
  0x27   : > { %p1248_p13 = pnand %p1247_p12, %p1241_p9 }
  0x29   : > { %1251 = shalt.err (!%p1248_p13)
}
  0x2a   : > { %1113 = dma.hbm_to_vmem [thread:$0]  (!%p1448_p7), %s1602_s3, 128, %s162_s7, [#allocation7]  }
  0x2b   : > { %s31_s16 = sadd.s32 1, %s1344_s23  ;;  %s34_s17 = sadd.s32 1, %s1348_s24 }
  0x2c   : > { %p32_p8 = scmp.ge.s32.totalorder %s31_s16, 3  ;;  %s41_s18 = sadd.s32 1, %s1332_s20 }
  0x2d   : > { %p48_p0 = scmp.ne.s32.totalorder %s1332_s20, %s1328_s19  ;;  %p49_p2 = scmp.eq.s32.totalorder %s1352_s0, 0 }
  0x2e   : > { %s1622_s16 = smov (%p32_p8, %s31_s16), 0  ;;  %s1624_s17 = smov (!%p32_p8, %s34_s17), %s1348_s24 }
  0x2f   : > { %p1482_p3 = por %p49_p2, %p48_p0  ;;  %p1120_p6 = scmp.lt.s32.totalorder %s1352_s0, 6 }
  0x30   : > { %p36_p9 = scmp.ge.s32.totalorder %s1624_s17, 2  ;;  %s172_s29 = sand.u32 1, %s1332_s20  }
  0x31   : > { %s988_s30 = sshll.u32 %s172_s29, 6  ;;  %s999_s5 = sshll.u32 %s1348_s24, 10 }
  0x32   : > { %s1626_s17 = smov (%p36_p9, %s1624_s17), 0  ;;  %s182_s11 = scalar_lea.hbm %s1600_s1, %s999_s5 }
  0x33   : > { %s38_s6 = ssub.s32 %s1348_s24, %s1626_s17  ;;  %s176_s12 = scalar_lea.vmem [#allocation4], %s988_s30 }
  0x34   : > { %p39_p7 = scmp.eq.s32.totalorder %s38_s6, 0  ;;  %s183_s13 = sshll.u32 %s176_s12, 4  ;;  %s184_s13 = int_to_ptr.vmem [resolvable:$true] %s183_s13 }
  0x35   : > { %p1498_p10 = pnand %p1120_p6, %p1482_p3  ;;  %s173_s9 = scalar_lea.sflag [#allocation5], %s172_s29 }
  0x36   : > { %s1503_s15 = scalar_select %p39_p7, %s1332_s20, %s41_s18  }
  0x37   : > { %p1254_p11 = pneg %p1498_p10  ;;  %s1265_s10 = scalar_lea.vmem %s184_s13, 1024 }
  0x38   : > { %p1266_p12 = scmp.ne.s32.totalorder %s184_s13, %s1265_s10  ;;  %s1359_s5 = smov [#allocation4]  }
  0x39   : > { %s1270_s6 = sshll.u32 %s1359_s5, 4  ;;  %s1271_s6 = int_to_ptr.vmem [resolvable:$false] %s1270_s6 }
  0x3a   : > { %p1268_p13 = pnand %p1266_p12, %p1254_p11  ;;  %s1272_s30 = scalar_lea.vmem %s1271_s6, 2048 }
  0x3b   : > { %p1273_p0 = scmp.lt.s32.totalorder %s184_s13, %s1271_s6  ;;  %p1274_p2 = scmp.lt.s32.totalorder %s1272_s30, %s1265_s10 }
  0x3c   : > { %p1269_p8 = pneg %p1268_p13 }
  0x3d   : > { %p1275_p3 = por %p1274_p2, %p1273_p0 }
  0x3f   : > { %p1276_p6 = pnand %p1275_p3, %p1269_p8 }
  0x41   : > { %1279 = shalt.err (!%p1276_p6)
}
  0x42   : > { %s1612_s18 = smov 8   ;;  %s1613_s25 = smov 128  }
  0x43   : > { %1117 = dma.hbm_to_vmem [thread:$0]  (!%p1498_p10), %s182_s11, 1024, %s184_s13, %s173_s9, %s1613_s25, %s1613_s25, %s1612_s18  }
  0x44   : > { %195 = sbr.rel (%p1440_p5) target bundleno = 318 (0x13e), region = 32  ;;  %s197_s29 = sand.u32 (!%p1440_p5), 1, %s1328_s19  }
  0x45   : > { %s992_s7 = sshll.u32 (!%p1440_p5), %s197_s29, 6  ;;  %s198_s8 = scalar_lea.sflag (!%p1440_p5), [#allocation5], %s197_s29 }
  0x46   : > { %s201_s12 = scalar_lea.vmem (!%p1440_p5), [#allocation4], %s992_s7 }
  0x49   : > { %1315 = dma.done.wait (%p1436_p4), %s198_s8, 1024  }
  0x4a   : > { %1317 = vsyncadd (%p1436_p4), %s198_s8, 4294966272 }
  0x4b   : > { %1319 = dma.done.wait (%p1428_p1), [#allocation7], 384  }
  0x4c   : > { %1321 = vsyncadd (%p1428_p1), [#allocation7], 4294966912  ;;  %s245_s28 = sld [smem:[#allocation3 + %s1336_s21]]  ;;  %vm253_vm0 = vcmask 130048   ;;  %v252_v0 = vld [vmem:[#allocation6 + $0x8] sm:$0xff]  ;;  %v251_v1 = vld [vmem:[#allocation6] sm:$0xff] }
  0x4d   : > { %v1524_v2 = vand.u32 4294901760, %v252_v0  ;;  %v1526_v3 = vand.u32 4294901760, %v251_v1  ;;  %p236_p1 = scmp.lt.s32.totalorder %s1340_s22, 1  ;;  %p238_p4 = scmp.lt.s32.totalorder %s1336_s21, 2  ;;  %vm859_vm1 = vcmask 195584  }
  0x4f   : > { %1036 = vmatprep.subr.mxu0 %v1524_v2  ;;  %v403_v11 = vsub.f32 %v252_v0, %v1524_v2  ;;  %v410_v13 = vsub.f32 %v251_v1, %v1526_v3  ;;  %s1628_s22 = smov (!%p236_p1, %s1340_s22), 1  ;;  %s1630_s21 = smov (!%p238_p4, %s1336_s21), 2 }
  0x50   : > { %1037 = vmatpush3.msra.mxu0 %v1524_v2  ;;  %s1096_s26 = smul.u32 12, %s1628_s22  ;;  %s995_s27 = sshll.u32 %s1630_s21, 2 }
  0x51   : > { %1038 = vmatprep.subr.mxu0 %v1526_v3  ;;  %v404_v17 = vand.u32 4294901760, %v403_v11  ;;  %v411_v19 = vand.u32 4294901760, %v410_v13 }
  0x52   : > { %s246_s9 = scalar_lea.vmem %s201_s12, %s245_s28 [#allocation4]  ;;  %1039 = vmatpush3.msra.mxu0 %v1526_v3  ;;  %s242_s10 = sadd.s32 %s1096_s26, %s995_s27 }
  0x53   : > { %v247_v4 = vld [vmem:[%s246_s9] sm:$0xff]  ;;  %v248_v5 = vld [vmem:[%s246_s9 + $0x10] sm:$0xff]  ;;  %v405_v23 = vsub.f32 %v403_v11, %v404_v17  ;;  %v412_v25 = vsub.f32 %v410_v13, %v411_v19  ;;  %1056 = vmatprep.subr.mxu0 %v403_v11  ;;  %s996_s11 = sshll.u32 %s242_s10, 3 }
  0x54   : > { %v249_v6 = vld [vmem:[%s246_s9 + $0x20] sm:$0xff]  ;;  %v255_v7 = vsel %vm253_vm0, %v247_v4, 0  ;;  %v258_v8 = vsel %vm253_vm0, %v248_v5, 0  ;;  %v250_v10 = vld [vmem:[%s246_s9 + $0x30] sm:$0xff]  ;;  %s244_s13 = scalar_lea.vmem %s1603_s4, %s996_s11 }
  0x55   : > { %v261_v9 = vsel %vm253_vm0, %v249_v6, 0  ;;  %v1533_v12 = vand.u32 4294901760, %v255_v7  ;;  %v1536_v14 = vand.u32 4294901760, %v258_v8  ;;  %v264_v16 = vsel %vm253_vm0, %v250_v10, 0  ;;  %v854_v5 = vld [vmem:[#allocation8] sm:$0xff] }
  0x56   : > { %v1539_v15 = vand.u32 4294901760, %v261_v9  ;;  %v363_v22 = vand.u32 4294901760, %v264_v16  ;;  %v406_v29 = vand.u32 4294901760, %v405_v23  ;;  %v413_v31 = vand.u32 4294901760, %v412_v25 }
  0x57   : > { %v334_v18 = vsub.f32 %v255_v7, %v1533_v12  ;;  %v344_v20 = vsub.f32 %v258_v8, %v1536_v14  ;;  %1050 = vmatprep.mubr.f32.mxu1 %v1533_v12 }
  0x58   : > { %v354_v21 = vsub.f32 %v261_v9, %v1539_v15  ;;  %v364_v28 = vsub.f32 %v264_v16, %v363_v22  ;;  %1046 = vmatprep.subr.mxu1 %v406_v29 }
  0x59   : > { %v335_v24 = vand.u32 4294901760, %v334_v18  ;;  %v345_v26 = vand.u32 4294901760, %v344_v20  ;;  %1047 = vmatpush3.msra.mxu1 %v406_v29 }
  0x5a   : > { %v355_v27 = vand.u32 4294901760, %v354_v21  ;;  %v365_v34 = vand.u32 4294901760, %v364_v28  ;;  %1048 = vmatprep.subr.mxu1 %v413_v31 }
  0x5b   : > { %v336_v30 = vsub.f32 %v334_v18, %v335_v24  ;;  %v346_v32 = vsub.f32 %v344_v20, %v345_v26  ;;  %1049 = vmatpush3.msra.mxu1 %v413_v31 }
  0x5c   : > { %v356_v33 = vsub.f32 %v354_v21, %v355_v27  ;;  %v366_v38 = vsub.f32 %v364_v28, %v365_v34  ;;  %1051 = vmatmul.mubr.f32.vlgmr.msra.gmra.mxu1 %v1536_v14  ;;  %1066 = vmatprep.subr.mxu1 %v1524_v2 }
  0x5d   : > { %v337_v35 = vand.u32 4294901760, %v336_v30  ;;  %v347_v36 = vand.u32 4294901760, %v346_v32  ;;  %1067 = vmatpush3.msra.mxu1 %v1524_v2  ;;  %1053 = vmatprep.mubr.f32.mxu1 %v1539_v15 }
  0x5e   : > { %v357_v37 = vand.u32 4294901760, %v356_v33  ;;  %v367_v39 = vand.u32 4294901760, %v366_v38  ;;  %1068 = vmatprep.subr.mxu1 %v1526_v3 }
  0x5f   : > { %1040 = vmatprep.mubr.f32.mxu0 %v337_v35  ;;  %1069 = vmatpush3.msra.mxu1 %v1526_v3 }
  0x60   : > { %1041 = vmatmul.mubr.f32.vlgmr.msra.gmra.mxu0 %v347_v36  ;;  %1054 = vmatmul.mubr.f32.gmra.mxu1 %v363_v22 }
  0x61   : > { %1057 = vmatpush3.msra.mxu0 %v403_v11  ;;  %1043 = vmatprep.mubr.f32.mxu0 %v357_v37 }
  0x62   : > { %1058 = vmatprep.subr.mxu0 %v410_v13  ;;  %1070 = vmatprep.mubr.f32.mxu1 %v335_v24 }
  0x63   : > { %1059 = vmatpush3.msra.mxu0 %v410_v13  ;;  %1086 = vmatprep.subr.mxu1 %v1524_v2 }
  0x64   : > { %1044 = vmatmul.mubr.f32.gmra.mxu0 %v367_v39  ;;  %1076 = vmatprep.subr.mxu0 %v404_v17 }
  0x65   : > { %1060 = vmatprep.mubr.f32.mxu0 %v334_v18  ;;  %1071 = vmatmul.mubr.f32.vlgmr.msra.gmra.mxu1 %v345_v26 }
  0x66   : > { %1087 = vmatpush3.msra.mxu1 %v1524_v2  ;;  %1073 = vmatprep.mubr.f32.mxu1 %v355_v27 }
  0x67   : > { %1088 = vmatprep.subr.mxu1 %v1526_v3 }
  0x68   : > { %1061 = vmatmul.mubr.f32.vlgmr.msra.gmra.mxu0 %v344_v20  ;;  %1089 = vmatpush3.msra.mxu1 %v1526_v3 }
  0x69   : > { %1077 = vmatpush3.msra.mxu0 %v404_v17  ;;  %1063 = vmatprep.mubr.f32.mxu0 %v354_v21 }
  0x6a   : > { %1078 = vmatprep.subr.mxu0 %v411_v19  ;;  %1074 = vmatmul.mubr.f32.gmra.mxu1 %v365_v34 }
  0x6b   : > { %1079 = vmatpush3.msra.mxu0 %v411_v19  ;;  %1090 = vmatprep.mubr.f32.mxu1 %v1533_v12 }
  0x6c   : > { %1064 = vmatmul.mubr.f32.gmra.mxu0 %v364_v28 }
  0x6d   : > { %1080 = vmatprep.mubr.f32.mxu0 %v1533_v12 }
  0x6e   : > { %1091 = vmatmul.mubr.f32.vlgmr.msra.gmra.mxu1 %v1536_v14 }
  0x6f   : > { %1093 = vmatprep.mubr.f32.mxu1 %v1539_v15 }
  0x70   : > { %1081 = vmatmul.mubr.f32.vlgmr.msra.gmra.mxu0 %v1536_v14 }
  0x71   : > { %1083 = vmatprep.mubr.f32.mxu0 %v1539_v15 }
  0x72   : > { %1094 = vmatmul.mubr.f32.gmra.mxu1 %v363_v22 }
  0x74   : > { %1084 = vmatmul.mubr.f32.gmra.mxu0 %v363_v22 }
 0x11c   : > { %v1052_v41 = vpop.f32.mrf.mxu1 }
 0x11e   : > { %v450_v43 = vpop.f32.mrf.mxu1 }
 0x120   : > { %v1042_v40 = vpop.f32.mrf.mxu0  ;;  %v1055_v45 = vpop.f32.mrf.mxu1 }
 0x121   : > { %v457_v49 = vadd.f32 %v1052_v41, %v1042_v40 }
 0x122   : > { %v339_v42 = vpop.f32.mrf.mxu0  ;;  %v462_v47 = vpop.f32.mrf.mxu1 }
 0x123   : > { %v451_v52 = vadd.f32 %v450_v43, %v339_v42 }
 0x124   : > { %v1045_v44 = vpop.f32.mrf.mxu0 }
 0x125   : > { %v1072_v50 = vpop.f32.mrf.mxu1  ;;  %v469_v56 = vadd.f32 %v1055_v45, %v1045_v44 }
 0x126   : > { %v359_v46 = vpop.f32.mrf.mxu0 }
 0x127   : > { %v640_v54 = vpop.f32.mrf.mxu1  ;;  %v463_v60 = vadd.f32 %v462_v47, %v359_v46 }
 0x128   : > { %v1062_v48 = vpop.f32.mrf.mxu0 }
 0x129   : > { %v552_v53 = vadd.f32 %v1062_v48, %v457_v49 }
 0x12a   : > { %v544_v51 = vpop.f32.mrf.mxu0  ;;  %v1075_v58 = vpop.f32.mrf.mxu1 }
 0x12b   : > { %v545_v57 = vadd.f32 %v544_v51, %v451_v52  ;;  %v649_v61 = vadd.f32 %v1072_v50, %v552_v53 }
 0x12c   : > { %v1065_v55 = vpop.f32.mrf.mxu0  ;;  %v656_v63 = vpop.f32.mrf.mxu1 }
 0x12d   : > { %v566_v62 = vadd.f32 %v1065_v55, %v469_v56  ;;  %v641_v1 = vadd.f32 %v640_v54, %v545_v57 }
 0x12e   : > { %v558_v59 = vpop.f32.mrf.mxu0  ;;  %v1092_v4 = vpop.f32.mrf.mxu1 }
 0x12f   : > { %v559_v2 = vadd.f32 %v558_v59, %v463_v60  ;;  %v665_v7 = vadd.f32 %v1075_v58, %v566_v62 }
 0x130   : > { %v1082_v0 = vpop.f32.mrf.mxu0  ;;  %v832_v10 = vpop.f32.mrf.mxu1 }
 0x131   : > { %v748_v3 = vadd.f32 %v1082_v0, %v649_v61  ;;  %v657_v12 = vadd.f32 %v656_v63, %v559_v2 }
 0x132   : > { %v741_v6 = vpop.f32.mrf.mxu0  ;;  %v1095_v16 = vpop.f32.mrf.mxu1 }
 0x133   : > { %v839_v8 = vadd.f32 %v1092_v4, %v748_v3  ;;  %v742_v9 = vadd.f32 %v741_v6, %v641_v1 }
 0x134   : > { %v1085_v11 = vpop.f32.mrf.mxu0  ;;  %v844_v21 = vpop.f32.mrf.mxu1 }
 0x135   : > { %v856_v13 = vmul.f32 %v854_v5, %v839_v8  ;;  %v833_v14 = vadd.f32 %v832_v10, %v742_v9  ;;  %v760_v15 = vadd.f32 %v1085_v11, %v665_v7 }
 0x136   : > { %v753_v17 = vpop.f32.mrf.mxu0 }
 0x137   : > { %861 = vst.msk [vmem:[%s244_s13 + $0x8] sm:$0xff] %vm859_vm1, %v856_v13  ;;  %v855_v18 = vmul.f32 %v854_v5, %v833_v14  ;;  %v851_v19 = vadd.f32 %v1095_v16, %v760_v15  ;;  %v754_v20 = vadd.f32 %v753_v17, %v657_v12 }
 0x139   : > { %860 = vst.msk [vmem:[%s244_s13] sm:$0xff] %vm859_vm1, %v855_v18  ;;  %v858_v22 = vmul.f32 %v854_v5, %v851_v19  ;;  %v845_v23 = vadd.f32 %v844_v21, %v754_v20 }
 0x13b   : > { %863 = vst.msk [vmem:[%s244_s13 + $0x18] sm:$0xff] %vm859_vm1, %v858_v22  ;;  %v857_v24 = vmul.f32 %v854_v5, %v845_v23 }
 0x13d   : > { %862 = vst.msk [vmem:[%s244_s13 + $0x10] sm:$0xff] %vm859_vm1, %v857_v24 }
 0x13e PF: > { %s22_s0 = sadd.s32 1, %s1352_s0   ;;  %s1614_s18 = smov %s1328_s19 }
 0x13f   : > { %p19_p5 = scmp.ge.s32.totalorder %s22_s0, 8   ;;  %s1615_s19 = smov %s1332_s20 }
 0x140   : > { %s1616_s20 = smov %s1503_s15  ;;  %s1617_s21 = smov %s1344_s23 }
 0x141   : > { %s1618_s22 = smov %s1348_s24  ;;  %s1619_s23 = smov %s1622_s16 }
 0x142   : > { %s1620_s24 = smov %s1626_s17  ;;  %21 = sbr.rel (!%p19_p5) target bundleno = 11 (0xb), region = 81 }
 0x147   :  { %893 = vsyncpa [#allocation5], 1 }
 0x148   :  { %895 = vsyncpa [#allocation5 + $0x1], 1 }
 0x149   :  { %896 = vsyncpa [#allocation7], 1 }

</bundles_post_ra>
